<compile_context>
chip_gen: v7x
topology: tpu7x:2x2x1
jax: 0.10.0
libtpu: 0.0.40
codegen_flags: <defaults>
</compile_context>

<pallas_src>
import functools
import math

import jax
import jax.numpy as jnp
from jax.experimental import pallas as pl
from jax.experimental.pallas import tpu as pltpu


def _round_up(x, m):
    return (x + m - 1) // m * m


def _compiler_params(vmem_estimate_bytes):
    """Parallel grid axis; raise the scoped-VMEM limit only when the tiles need it."""
    kwargs = dict(dimension_semantics=("parallel",))
    if vmem_estimate_bytes > 24 * 1024 * 1024:
        # Cap at 64 MiB so the request is also legal on v7x (64 MiB physical VMEM).
        kwargs["vmem_limit_bytes"] = int(min(64 * 1024 * 1024, 2 * vmem_estimate_bytes))
    return pltpu.CompilerParams(**kwargs)


# ----------------------------------------------------------------------------
# Fast path: small table resident in VMEM, gather as one-hot matmul on the MXU.
# ----------------------------------------------------------------------------
def _onehot_gather_kernel(ids_ref, table_ref, o_ref, *, scale):
    ids = ids_ref[...]                                        # (TB, 1) int32
    tb = ids.shape[0]
    vocab = table_ref.shape[0]
    lane_iota = jax.lax.broadcasted_iota(jnp.int32, (tb, vocab), 1)
    onehot = (lane_iota == ids).astype(table_ref.dtype)       # (TB, V), exactly 0/1
    rows = jnp.dot(onehot, table_ref[...], preferred_element_type=jnp.float32)
    o_ref[...] = (rows * scale).astype(o_ref.dtype)


# ----------------------------------------------------------------------------
# General path: HBM-resident table, scalar-prefetched ids, double-buffered
# per-row DMAs (chunked within each grid step).
# ----------------------------------------------------------------------------
def _dma_gather_kernel(ids_ref, table_ref, o_ref, rows_ref, sem_ref, *, tb, cb, scale):
    nc = tb // cb                          # chunks per grid step (static)
    base = pl.program_id(0) * tb           # first token of this step

    def issue_chunk(c, slot):
        """Issue cb concurrent row DMAs for chunk c into staging slot `slot`."""
        chunk_base = base + c * cb

        def body(j, carry):
            tok = ids_ref[chunk_base + j]                     # scalar read from SMEM
            pltpu.make_async_copy(
                table_ref.at[pl.ds(tok, 1), :],               # (1, E) row in HBM
                rows_ref.at[slot, pl.ds(j, 1), :],            # (1, E) staging row
                sem_ref.at[slot],                             # shared per-slot sem
            ).start()
            return carry

        jax.lax.fori_loop(0, cb, body, 0, unroll=8)

    def wait_chunk(slot):
        """Wait for all cb row copies of a slot (cb row-sized decrements on the sem)."""
        def body(j, carry):
            pltpu.make_async_copy(
                table_ref.at[pl.ds(0, 1), :],
                rows_ref.at[slot, pl.ds(0, 1), :],
                sem_ref.at[slot],
            ).wait()
            return carry

        jax.lax.fori_loop(0, cb, body, 0, unroll=8)

    issue_chunk(0, 0)                       # prime slot 0
    for c in range(nc):                     # static, small (tb // cb)
        slot = c & 1
        if c + 1 < nc:
            # Read next chunk's ids and launch its DMAs BEFORE waiting on this one.
            issue_chunk(c + 1, 1 - slot)
        wait_chunk(slot)
        o_ref[pl.ds(c * cb, cb), :] = (
            rows_ref[slot].astype(jnp.float32) * scale
        ).astype(o_ref.dtype)


# ----------------------------------------------------------------------------
# Wrapper: nn.Embedding(tokens.long()) * sqrt(emb_size)
# ----------------------------------------------------------------------------
def token_embedding(tokens, emb_table, *, emb_size=None, tokens_per_step=256,
                    rows_per_chunk=32, force_dma=False):
    """tokens: int array (any shape); emb_table: (vocab, emb). Returns tokens.shape + (emb,)."""
    orig_shape = tokens.shape
    vocab, emb = emb_table.shape
    if emb_size is None:
        emb_size = emb
    scale = float(math.sqrt(emb_size))
    out_dtype = emb_table.dtype
    itemsize = emb_table.dtype.itemsize

    ids = tokens.reshape(-1).astype(jnp.int32)       # PyTorch .long(); int32 suffices
    n = ids.shape[0]

    # Sublane packing: keep the token block a multiple of the packed sublane count
    # (8 for f32, 16 for bf16) so tiles stay dense.
    sub = max(8, 32 // itemsize)
    # Cap the token block so the pipelined (tb, emb) output double-buffer stays ~<=16 MiB.
    tb_cap = max(sub, (16 * 1024 * 1024) // max(1, 2 * emb * itemsize))
    tb = min(int(tokens_per_step), _round_up(n, sub), tb_cap)
    tb = max(sub, _round_up(tb, sub))
    cb = max(sub, min(int(rows_per_chunk), tb))
    cb = _round_up(cb, sub)
    tb = _round_up(tb, cb)                           # chunks tile the block exactly

    n_pad = _round_up(n, tb)
    if n_pad != n:
        ids = jnp.pad(ids, (0, n_pad - n))           # pad with token 0 (valid row)
    grid = (n_pad // tb,)

    table_bytes = vocab * emb * itemsize
    use_onehot = (not force_dma) and table_bytes <= 4 * 1024 * 1024 and vocab <= 8192

    if use_onehot:
        # Small-table fast path: table VMEM-resident, one-hot gather on the MXU.
        kernel = functools.partial(_onehot_gather_kernel, scale=scale)
        est = (table_bytes + 2 * tb * emb * itemsize + 2 * tb * 4
               + tb * vocab * 4 + tb * emb * 4)
        out = pl.pallas_call(
            kernel,
            out_shape=jax.ShapeDtypeStruct((n_pad, emb), out_dtype),
            grid_spec=pltpu.PrefetchScalarGridSpec(
                num_scalar_prefetch=0,
                grid=grid,
                in_specs=[
                    pl.BlockSpec((tb, 1), lambda s: (s, 0)),        # ids per step
                    pl.BlockSpec((vocab, emb), lambda s: (0, 0)),   # resident table
                ],
                out_specs=pl.BlockSpec((tb, emb), lambda s: (s, 0)),
            ),
            compiler_params=_compiler_params(est),
        )(ids.reshape(n_pad, 1), emb_table)
    else:
        # Large-table path: HBM row DMAs driven by scalar-prefetched ids.
        kernel = functools.partial(_dma_gather_kernel, tb=tb, cb=cb, scale=scale)
        est = 2 * tb * emb * itemsize + 2 * cb * emb * itemsize
        out = pl.pallas_call(
            kernel,
            out_shape=jax.ShapeDtypeStruct((n_pad, emb), out_dtype),
            grid_spec=pltpu.PrefetchScalarGridSpec(
                num_scalar_prefetch=1,                        # ids -> SMEM before the grid
                grid=grid,
                in_specs=[pl.BlockSpec(memory_space=pl.ANY)],  # table stays in HBM
                out_specs=pl.BlockSpec((tb, emb), lambda s, ids_ref: (s, 0)),
                scratch_shapes=[
                    pltpu.VMEM((2, cb, emb), out_dtype),       # double-buffered staging
                    pltpu.SemaphoreType.DMA((2,)),             # one shared sem per slot
                ],
            ),
            compiler_params=_compiler_params(est),
        )(ids, emb_table)

    return out[:n].reshape(*orig_shape, emb)


if __name__ == "__main__":
    key = jax.random.PRNGKey(0)
    k1, k2, k3, k4, k5, k6 = jax.random.split(key, 6)

    def reference(tok, table, e=None):
        e = table.shape[1] if e is None else e
        return jnp.take(table, tok, axis=0) * math.sqrt(e)

    # Case 1: demo-sized model (vocab=1000, emb=128, batch=2, seq=8) -> fast path.
    VOCAB, EMB, BATCH, SEQ = 1000, 128, 2, 8
    table = jax.random.normal(k1, (VOCAB, EMB), jnp.float32)
    tokens = jax.random.randint(k2, (BATCH, SEQ), 0, VOCAB, dtype=jnp.int32)

    fwd = jax.jit(functools.partial(token_embedding, emb_size=EMB))
    out = jax.block_until_ready(fwd(tokens, table))
    ref = reference(tokens, table, EMB)
    assert out.shape == (BATCH, SEQ, EMB), out.shape
    assert bool(jnp.all(jnp.isfinite(out)))
    assert bool(jnp.allclose(out, ref, rtol=1e-6, atol=1e-6)), \
        float(jnp.max(jnp.abs(out - ref)))

    # Case 1b: same inputs through the large-table (HBM row-DMA) path.
    out_dma = jax.block_until_ready(token_embedding(tokens, table, force_dma=True))
    assert bool(jnp.allclose(out_dma, ref, rtol=1e-6, atol=1e-6))

    # Case 2: ragged sizes (emb not a lane multiple, token count not a block multiple).
    table2 = jax.random.normal(k3, (50, 96), jnp.float32)
    tokens2 = jax.random.randint(k4, (3, 5), 0, 50, dtype=jnp.int32)
    ref2 = reference(tokens2, table2)
    out2 = jax.block_until_ready(token_embedding(tokens2, table2))
    assert out2.shape == (3, 5, 96), out2.shape
    assert bool(jnp.allclose(out2, ref2, rtol=1e-6, atol=1e-6))
    out2_dma = jax.block_until_ready(token_embedding(tokens2, table2, force_dma=True))
    assert bool(jnp.allclose(out2_dma, ref2, rtol=1e-6, atol=1e-6))

    # Case 3: longer token stream -> multi-step grid + multi-chunk double buffering
    # on the DMA path (640 tokens -> 3 grid steps of 256, 8 chunks of 32 per step).
    VOCAB3, EMB3 = 4096, 256
    table3 = jax.random.normal(k5, (VOCAB3, EMB3), jnp.float32)
    tokens3 = jax.random.randint(k6, (4, 160), 0, VOCAB3, dtype=jnp.int32)
    out3 = jax.block_until_ready(token_embedding(tokens3, table3, force_dma=True))
    ref3 = reference(tokens3, table3)
    assert out3.shape == (4, 160, EMB3), out3.shape
    assert bool(jnp.allclose(out3, ref3, rtol=1e-6, atol=1e-6))

    print("KERNEL_OK")
</pallas_src>

<mosaic_0001>
module attributes {stable_mosaic.version = 11 : i64} {
  func.func @_onehot_gather_kernel(%arg0: i32, %arg1: memref<16x1xi32, #tpu.memory_space<vmem>>, %arg2: memref<1000x128xf32, #tpu.memory_space<vmem>>, %arg3: memref<16x128xf32, #tpu.memory_space<vmem>>) attributes {dimension_semantics = [#tpu.dimension_semantics<parallel>], iteration_bounds = array<i64: 1>, scalar_prefetch = 0 : i64, scratch_operands = 0 : i64, tpu.core_type = #tpu.core_type<tc>, window_params = [{transform_indices = @transform_0, window_bounds = array<i64: 16, 1>}, {pipeline_mode = #tpu.pipeline_mode<synchronous>, transform_indices = @transform_1, window_bounds = array<i64: 1000, 128>}, {transform_indices = @transform_2, window_bounds = array<i64: 16, 128>}]} {
    %c0 = arith.constant 0 : index
    %c0_0 = arith.constant 0 : index
    %0 = vector.load %arg1[%c0, %c0_0] : memref<16x1xi32, #tpu.memory_space<vmem>>, vector<16x1xi32>
    %1 = tpu.iota {dimensions = array<i32: 1>} : vector<16x1000xi32>
    %2 = vector.broadcast %0 : vector<16x1xi32> to vector<16x1000xi32>
    %3 = arith.cmpi eq, %1, %2 : vector<16x1000xi32>
    %4 = arith.extui %3 : vector<16x1000xi1> to vector<16x1000xi32>
    %5 = arith.sitofp %4 : vector<16x1000xi32> to vector<16x1000xf32>
    %c0_1 = arith.constant 0 : index
    %c0_2 = arith.constant 0 : index
    %6 = vector.load %arg2[%c0_1, %c0_2] : memref<1000x128xf32, #tpu.memory_space<vmem>>, vector<1000x128xf32>
    %cst = arith.constant dense<0.000000e+00> : vector<16x128xf32>
    %7 = tpu.matmul %5, %6, %cst {dimension_numbers = #tpu.dot_dimension_numbers<[1], [0], [0], [1], [0, 0, 1, 1], [], []>} : vector<16x1000xf32>, vector<1000x128xf32>, vector<16x128xf32> -> vector<16x128xf32>
    %cst_3 = arith.constant 11.3137083 : f32
    %8 = vector.broadcast %cst_3 : f32 to vector<16x128xf32>
    %9 = arith.mulf %7, %8 : vector<16x128xf32>
    %c0_4 = arith.constant 0 : index
    %c0_5 = arith.constant 0 : index
    %10 = vector.load %arg3[%c0_4, %c0_5] : memref<16x128xf32, #tpu.memory_space<vmem>>, vector<16x128xf32>
    tpu.vector_store %arg3[%c0_4, %c0_5], %9 {strides = array<i32>} : memref<16x128xf32, #tpu.memory_space<vmem>>, vector<16x128xf32>,
    return
  }
  func.func @transform_0(%arg0: i32) -> (i32, i32) {
    %c0_i32 = arith.constant 0 : i32
    %c0_i32_0 = arith.constant 0 : i32
    return %arg0, %c0_i32 : i32, i32
  }
  func.func @transform_1(%arg0: i32) -> (i32, i32) {
    %c0_i32 = arith.constant 0 : i32
    %c0_i32_0 = arith.constant 0 : i32
    %c0_i32_1 = arith.constant 0 : i32
    return %c0_i32, %c0_i32_0 : i32, i32
  }
  func.func @transform_2(%arg0: i32) -> (i32, i32) {
    %c0_i32 = arith.constant 0 : i32
    %c0_i32_0 = arith.constant 0 : i32
    return %arg0, %c0_i32 : i32, i32
  }
}

</mosaic_0001>

<bundles_post_ra>
// kernel: token_embedding.1
= control target key start
LH: loop header
LB: loop body
LE: loop exit
PB: predicated region body
PF: predicated region fallthrough
CT: control target
= control target key end

     0   :  { %7 = vsyncpa [#allocation3], 0  ;;  %s1019_s0 = inlined_call_operand.vmem [shape: s32[16,1], index: 0, kind: input, shape index: {}]   ;;  %s1020_s1 = inlined_call_operand.hbm [shape: f32[1000,128], index: 1, kind: input, shape index: {}]   ;;  %s1021_s2 = inlined_call_operand.hbm [shape: f32[16,128], index: 2, kind: output, shape index: {}]  }
   0x1   :  { %8 = vsyncpa [#allocation4], 0  ;;  %s885_s9 = smov [#allocation2]   ;;  %s837_s13 = scalar_lea.hbm %s1020_s1, 16000 }
   0x2   :  { %s16_s10 = sshll.u32 %s885_s9, 4  ;;  %p838_p0 = scmp.ne.s32.totalorder %s1020_s1, %s837_s13  ;;  %s17_s10 = int_to_ptr.vmem [resolvable:$true] %s16_s10 }
   0x3   :  { %p841_p1 = scmp.lt.u32.totalorder %s837_s13, %s1020_s1 }
   0x5   :  { %p843_p2 = pnand %p841_p1, %p838_p0 }
   0x7   :  { %846 = shalt.err (!%p843_p2)
}
   0x8   :  { %s847_s18 = scalar_lea.vmem %s17_s10, 16000  ;;  %p852_p4 = scmp.lt.s32.totalorder %s17_s10, %s17_s10 }
   0x9   :  { %p848_p3 = scmp.ne.s32.totalorder %s17_s10, %s847_s18  ;;  %p853_p5 = scmp.lt.s32.totalorder %s847_s18, %s847_s18 }
   0xb   :  { %p854_p6 = por %p853_p5, %p852_p4 }
   0xd   :  { %p855_p7 = pnand %p854_p6, %p848_p3 }
   0xf   :  { %858 = shalt.err (!%p855_p7)
}
  0x10   :  { %s886_s19 = smov 128   ;;  %s887_s20 = smov 8  }
  0x11   :  { %22 = dma.hbm_to_vmem [thread:$0]  %s1020_s1, 16000, %s17_s10, [#allocation3], %s886_s19, %s886_s19, %s887_s20  }
  0x12   :  { %881 = dma.done.wait [#allocation3], 16000  }
  0x13   :  { %882 = vsyncadd [#allocation3], 4294951296  ;;  %v888_v0 = vmov 0   ;;  %v26_v1 = vld [vmem:[%s1019_s0] sm:$0xff]  ;;  %v27_v2 = vld [vmem:[%s1019_s0 + $0x8] sm:$0xff]  ;;  %vm216_vm9 = vcmask 850944  }
  0x14   :  { %836 = vset.pattern.permute.xlu0 %v888_v0  ;;  %v107_v3 = vld [vmem:[#allocation2 + $0x80] sm:$0xff]  ;;  %v108_v4 = vld [vmem:[#allocation2 + $0x88] sm:$0xff]  ;;  %v109_v14 = vld [vmem:[#allocation2 + $0x90] sm:$0xff]  ;;  %s892_s0 = smov [#allocation5]  }
  0x15   :  { %38 = vperm.xlu0 %836, %v26_v1   ;;  %v139_v5 = vld [vmem:[#allocation2 + $0x180] sm:$0xff]  ;;  %v140_v6 = vld [vmem:[#allocation2 + $0x188] sm:$0xff]  ;;  %v690_v7 = vpack.c.bf16 %v108_v4, %v107_v3  ;;  %v110_v15 = vld [vmem:[#allocation2 + $0x98] sm:$0xff]  ;;  %s532_s1 = sshll.u32 %s892_s0, 4  ;;  %s533_s1 = int_to_ptr.vmem [resolvable:$true] %s532_s1 }
  0x16   :  { %v722_v8 = vpack.c.bf16 %v140_v6, %v139_v5  ;;  %v91_v9 = vld [vmem:[#allocation2] sm:$0xff]  ;;  %v92_v10 = vld [vmem:[#allocation2 + $0x8] sm:$0xff]  ;;  %v694_v17 = vpack.c.bf16 %v110_v15, %v109_v14  ;;  %v141_v18 = vld [vmem:[#allocation2 + $0x190] sm:$0xff]  ;;  %s859_s27 = scalar_lea.vmem %s533_s1, 256  ;;  %p864_p9 = scmp.lt.s32.totalorder %s533_s1, %s533_s1 }
  0x17   :  { %v123_v11 = vld [vmem:[#allocation2 + $0x100] sm:$0xff]  ;;  %v692_v12 = vpack.c.bf16 %v92_v10, %v91_v9  ;;  %v124_v13 = vld [vmem:[#allocation2 + $0x108] sm:$0xff]  ;;  %691 = vmatprep.subr.bf16.mxu0 %v690_v7  ;;  %v142_v19 = vld [vmem:[#allocation2 + $0x198] sm:$0xff]  ;;  %p860_p8 = scmp.ne.s32.totalorder %s533_s1, %s859_s27  ;;  %p865_p10 = scmp.lt.s32.totalorder %s859_s27, %s859_s27 }
  0x18   :  { %723 = vmatprep.subr.bf16.mxu1 %v722_v8  ;;  %v724_v16 = vpack.c.bf16 %v124_v13, %v123_v11  ;;  %v93_v20 = vld [vmem:[#allocation2 + $0x10] sm:$0xff]  ;;  %v726_v21 = vpack.c.bf16 %v142_v19, %v141_v18  ;;  %v94_v22 = vld [vmem:[#allocation2 + $0x18] sm:$0xff]  ;;  %v111_v27 = vld [vmem:[#allocation2 + $0xa0] sm:$0xff] }
  0x19   :  { %41 = vperm.xlu0 %836, %v27_v2   ;;  %693 = vmatpush3.bf16.msra.mxu0 %v692_v12  ;;  %v125_v23 = vld [vmem:[#allocation2 + $0x110] sm:$0xff]  ;;  %v126_v24 = vld [vmem:[#allocation2 + $0x118] sm:$0xff]  ;;  %v696_v25 = vpack.c.bf16 %v94_v22, %v93_v20  ;;  %v112_v28 = vld [vmem:[#allocation2 + $0xa8] sm:$0xff]  ;;  %p866_p11 = por %p865_p10, %p864_p9 }
  0x1a   :  { %725 = vmatpush3.bf16.msra.mxu1 %v724_v16  ;;  %695 = vmatprep.subr.bf16.mxu0 %v694_v17  ;;  %v728_v26 = vpack.c.bf16 %v126_v24, %v125_v23  ;;  %v143_v29 = vld [vmem:[#allocation2 + $0x1a0] sm:$0xff]  ;;  %v698_v30 = vpack.c.bf16 %v112_v28, %v111_v27  ;;  %v144_v31 = vld [vmem:[#allocation2 + $0x1a8] sm:$0xff]  ;;  %v113_v37 = vld [vmem:[#allocation2 + $0xb0] sm:$0xff] }
  0x1b   :  { %727 = vmatprep.subr.bf16.mxu1 %v726_v21  ;;  %v95_v32 = vld [vmem:[#allocation2 + $0x20] sm:$0xff]  ;;  %v96_v33 = vld [vmem:[#allocation2 + $0x28] sm:$0xff]  ;;  %v730_v34 = vpack.c.bf16 %v144_v31, %v143_v29  ;;  %v114_v39 = vld [vmem:[#allocation2 + $0xb8] sm:$0xff]  ;;  %p867_p12 = pnand %p866_p11, %p860_p8 }
  0x1c   :  { %v127_v35 = vld [vmem:[#allocation2 + $0x120] sm:$0xff]  ;;  %v128_v36 = vld [vmem:[#allocation2 + $0x128] sm:$0xff]  ;;  %v700_v38 = vpack.c.bf16 %v96_v33, %v95_v32  ;;  %v145_v40 = vld [vmem:[#allocation2 + $0x1b0] sm:$0xff]  ;;  %v702_v43 = vpack.c.bf16 %v114_v39, %v113_v37  ;;  %v28_v39 = vlaneseq }
  0x1d   :  { %697 = vmatpush3.bf16.msra.mxu0 %v696_v25  ;;  %v146_v41 = vld [vmem:[#allocation2 + $0x1b8] sm:$0xff]  ;;  %v732_v42 = vpack.c.bf16 %v128_v36, %v127_v35  ;;  %v97_v44 = vld [vmem:[#allocation2 + $0x30] sm:$0xff]  ;;  %v115_v49 = vld [vmem:[#allocation2 + $0xc0] sm:$0xff] }
  0x1e   :  { %729 = vmatpush3.bf16.msra.mxu1 %v728_v26  ;;  %699 = vmatprep.subr.bf16.mxu0 %v698_v30  ;;  %v98_v45 = vld [vmem:[#allocation2 + $0x38] sm:$0xff]  ;;  %v129_v46 = vld [vmem:[#allocation2 + $0x130] sm:$0xff]  ;;  %v734_v47 = vpack.c.bf16 %v146_v41, %v145_v40  ;;  %v116_v50 = vld [vmem:[#allocation2 + $0xc8] sm:$0xff]  ;;  %v930_v40 = vand.u32 127, %v28_v39 }
  0x1f   :  { %731 = vmatprep.subr.bf16.mxu1 %v730_v34  ;;  %v130_v48 = vld [vmem:[#allocation2 + $0x138] sm:$0xff]  ;;  %v147_v51 = vld [vmem:[#allocation2 + $0x1c0] sm:$0xff]  ;;  %v148_v52 = vld [vmem:[#allocation2 + $0x1c8] sm:$0xff]  ;;  %v704_v53 = vpack.c.bf16 %v98_v45, %v97_v44  ;;  %v706_v55 = vpack.c.bf16 %v116_v50, %v115_v49 }
  0x20   :  { %v736_v54 = vpack.c.bf16 %v130_v48, %v129_v46  ;;  %v99_v56 = vld [vmem:[#allocation2 + $0x40] sm:$0xff]  ;;  %v100_v57 = vld [vmem:[#allocation2 + $0x48] sm:$0xff]  ;;  %v738_v59 = vpack.c.bf16 %v148_v52, %v147_v51  ;;  %v117_v61 = vld [vmem:[#allocation2 + $0xd0] sm:$0xff]  ;;  %v30_v44 = vadd.s32 128, %v930_v40  ;;  %v32_v45 = vadd.s32 384, %v930_v40 }
  0x21   :  { %701 = vmatpush3.bf16.msra.mxu0 %v700_v38  ;;  %v131_v58 = vld [vmem:[#allocation2 + $0x140] sm:$0xff]  ;;  %v132_v60 = vld [vmem:[#allocation2 + $0x148] sm:$0xff]  ;;  %v118_v62 = vld [vmem:[#allocation2 + $0xd8] sm:$0xff]  ;;  %v708_v1 = vpack.c.bf16 %v100_v57, %v99_v56  ;;  %v889_v38 = vmov 0.0|0.0   ;;  %v31_v46 = vadd.s32 256, %v930_v40 }
  0x22   :  { %733 = vmatpush3.bf16.msra.mxu1 %v732_v42  ;;  %703 = vmatprep.subr.bf16.mxu0 %v702_v43  ;;  %v149_v63 = vld [vmem:[#allocation2 + $0x1d0] sm:$0xff]  ;;  %v150_v0 = vld [vmem:[#allocation2 + $0x1d8] sm:$0xff]  ;;  %v740_v2 = vpack.c.bf16 %v132_v60, %v131_v58  ;;  %v710_v3 = vpack.c.bf16 %v118_v62, %v117_v61  ;;  %v119_v9 = vld [vmem:[#allocation2 + $0xe0] sm:$0xff] }
  0x23   :  { %735 = vmatprep.subr.bf16.mxu1 %v734_v47  ;;  %v101_v4 = vld [vmem:[#allocation2 + $0x50] sm:$0xff]  ;;  %v102_v5 = vld [vmem:[#allocation2 + $0x58] sm:$0xff]  ;;  %v742_v7 = vpack.c.bf16 %v150_v0, %v149_v63  ;;  %v120_v10 = vld [vmem:[#allocation2 + $0xe8] sm:$0xff] }
  0x24   :  { %v133_v6 = vld [vmem:[#allocation2 + $0x150] sm:$0xff]  ;;  %v134_v8 = vld [vmem:[#allocation2 + $0x158] sm:$0xff]  ;;  %v151_v11 = vld [vmem:[#allocation2 + $0x1e0] sm:$0xff]  ;;  %v712_v13 = vpack.c.bf16 %v102_v5, %v101_v4  ;;  %v714_v15 = vpack.c.bf16 %v120_v10, %v119_v9  ;;  %v891_v9 = vmov 0.0  }
  0x25   :  { %705 = vmatpush3.bf16.msra.mxu0 %v704_v53  ;;  %v152_v12 = vld [vmem:[#allocation2 + $0x1e8] sm:$0xff]  ;;  %v744_v14 = vpack.c.bf16 %v134_v8, %v133_v6  ;;  %v103_v16 = vld [vmem:[#allocation2 + $0x60] sm:$0xff]  ;;  %v121_v21 = vld [vmem:[#allocation2 + $0xf0] sm:$0xff] }
  0x26   :  { %737 = vmatpush3.bf16.msra.mxu1 %v736_v54  ;;  %707 = vmatprep.subr.bf16.mxu0 %v706_v55  ;;  %v104_v17 = vld [vmem:[#allocation2 + $0x68] sm:$0xff]  ;;  %v135_v18 = vld [vmem:[#allocation2 + $0x160] sm:$0xff]  ;;  %v746_v19 = vpack.c.bf16 %v152_v12, %v151_v11  ;;  %v122_v22 = vld [vmem:[#allocation2 + $0xf8] sm:$0xff]  ;;  %v938_v55 = vadd.s32 896, %v930_v40 }
  0x27   :  { %739 = vmatprep.subr.bf16.mxu1 %v738_v59  ;;  %v136_v20 = vld [vmem:[#allocation2 + $0x168] sm:$0xff]  ;;  %v153_v23 = vld [vmem:[#allocation2 + $0x1f0] sm:$0xff]  ;;  %v154_v24 = vld [vmem:[#allocation2 + $0x1f8] sm:$0xff]  ;;  %v716_v25 = vpack.c.bf16 %v104_v17, %v103_v16  ;;  %v718_v27 = vpack.c.bf16 %v122_v22, %v121_v21  ;;  %v890_v59 = vmov 1.0  }
  0x28   :  { %v748_v26 = vpack.c.bf16 %v136_v20, %v135_v18  ;;  %v105_v28 = vld [vmem:[#allocation2 + $0x70] sm:$0xff]  ;;  %v106_v29 = vld [vmem:[#allocation2 + $0x78] sm:$0xff]  ;;  %v750_v31 = vpack.c.bf16 %v154_v24, %v153_v23  ;;  %v171_v33 = vld [vmem:[#allocation2 + $0x280] sm:$0xff] }
  0x29   :  { %709 = vmatpush3.bf16.msra.mxu0 %v708_v1  ;;  %v137_v30 = vld [vmem:[#allocation2 + $0x170] sm:$0xff]  ;;  %v138_v32 = vld [vmem:[#allocation2 + $0x178] sm:$0xff]  ;;  %v172_v34 = vld [vmem:[#allocation2 + $0x288] sm:$0xff]  ;;  %v720_v35 = vpack.c.bf16 %v106_v29, %v105_v28  ;;  %v952_v1 = vadd.s32 640, %v930_v40 }
  0x2a   :  { %741 = vmatpush3.bf16.msra.mxu1 %v740_v2  ;;  %711 = vmatprep.subr.bf16.mxu0 %v710_v3  ;;  %v752_v36 = vpack.c.bf16 %v138_v32, %v137_v30  ;;  %v754_v37 = vpack.c.bf16 %v172_v34, %v171_v33  ;;  %v155_v41 = vld [vmem:[#allocation2 + $0x200] sm:$0xff]  ;;  %v156_v42 = vld [vmem:[#allocation2 + $0x208] sm:$0xff]  ;;  %v173_v48 = vld [vmem:[#allocation2 + $0x290] sm:$0xff] }
  0x2b   :  { %743 = vmatprep.subr.bf16.mxu1 %v742_v7  ;;  %v187_v43 = vld [vmem:[#allocation2 + $0x300] sm:$0xff]  ;;  %v188_v47 = vld [vmem:[#allocation2 + $0x308] sm:$0xff]  ;;  %v174_v49 = vld [vmem:[#allocation2 + $0x298] sm:$0xff]  ;;  %v756_v51 = vpack.c.bf16 %v156_v42, %v155_v41 }
  0x2c   :  { %v787_v52 = vpack.c.bf16 %v188_v47, %v187_v43  ;;  %v758_v53 = vpack.c.bf16 %v174_v49, %v173_v48  ;;  %v157_v54 = vld [vmem:[#allocation2 + $0x210] sm:$0xff]  ;;  %v158_v56 = vld [vmem:[#allocation2 + $0x218] sm:$0xff]  ;;  %v175_v60 = vld [vmem:[#allocation2 + $0x2a0] sm:$0xff] }
  0x2d   :  { %713 = vmatpush3.bf16.msra.mxu0 %v712_v13  ;;  %v189_v57 = vld [vmem:[#allocation2 + $0x310] sm:$0xff]  ;;  %v190_v58 = vld [vmem:[#allocation2 + $0x318] sm:$0xff]  ;;  %v176_v61 = vld [vmem:[#allocation2 + $0x2a8] sm:$0xff]  ;;  %v760_v63 = vpack.c.bf16 %v158_v56, %v157_v54 }
  0x2e   :  { %745 = vmatpush3.bf16.msra.mxu1 %v744_v14  ;;  %715 = vmatprep.subr.bf16.mxu0 %v714_v15  ;;  %v790_v0 = vpack.c.bf16 %v190_v58, %v189_v57  ;;  %v159_v2 = vld [vmem:[#allocation2 + $0x220] sm:$0xff]  ;;  %v160_v3 = vld [vmem:[#allocation2 + $0x228] sm:$0xff]  ;;  %v762_v6 = vpack.c.bf16 %v176_v61, %v175_v60  ;;  %v177_v7 = vld [vmem:[#allocation2 + $0x2b0] sm:$0xff] }
  0x2f   :  { %747 = vmatprep.subr.bf16.mxu1 %v746_v19  ;;  %v191_v4 = vld [vmem:[#allocation2 + $0x320] sm:$0xff]  ;;  %v192_v5 = vld [vmem:[#allocation2 + $0x328] sm:$0xff]  ;;  %v178_v8 = vld [vmem:[#allocation2 + $0x2b8] sm:$0xff]  ;;  %v764_v11 = vpack.c.bf16 %v160_v3, %v159_v2 }
  0x30   :  { %v793_v12 = vpack.c.bf16 %v192_v5, %v191_v4  ;;  %v161_v13 = vld [vmem:[#allocation2 + $0x230] sm:$0xff]  ;;  %v766_v14 = vpack.c.bf16 %v178_v8, %v177_v7  ;;  %v162_v15 = vld [vmem:[#allocation2 + $0x238] sm:$0xff]  ;;  %v179_v18 = vld [vmem:[#allocation2 + $0x2c0] sm:$0xff] }
  0x31   :  { %717 = vmatpush3.bf16.msra.mxu0 %v716_v25  ;;  %v193_v16 = vld [vmem:[#allocation2 + $0x330] sm:$0xff]  ;;  %v194_v17 = vld [vmem:[#allocation2 + $0x338] sm:$0xff]  ;;  %v180_v19 = vld [vmem:[#allocation2 + $0x2c8] sm:$0xff]  ;;  %v768_v20 = vpack.c.bf16 %v162_v15, %v161_v13 }
  0x32   :  { %749 = vmatpush3.bf16.msra.mxu1 %v748_v26  ;;  %719 = vmatprep.subr.bf16.mxu0 %v718_v27  ;;  %v796_v21 = vpack.c.bf16 %v194_v17, %v193_v16  ;;  %v163_v22 = vld [vmem:[#allocation2 + $0x240] sm:$0xff]  ;;  %v770_v23 = vpack.c.bf16 %v180_v19, %v179_v18  ;;  %v164_v24 = vld [vmem:[#allocation2 + $0x248] sm:$0xff]  ;;  %v181_v27 = vld [vmem:[#allocation2 + $0x2d0] sm:$0xff]  ;;  %v35_v18 = vadd.s32 768, %v930_v40 }
  0x33   :  { %751 = vmatprep.subr.bf16.mxu1 %v750_v31  ;;  %v195_v25 = vld [vmem:[#allocation2 + $0x340] sm:$0xff]  ;;  %v196_v26 = vld [vmem:[#allocation2 + $0x348] sm:$0xff]  ;;  %v182_v28 = vld [vmem:[#allocation2 + $0x2d8] sm:$0xff]  ;;  %v772_v29 = vpack.c.bf16 %v164_v24, %v163_v22 }
  0x34   :  { %v799_v30 = vpack.c.bf16 %v196_v26, %v195_v25  ;;  %v165_v31 = vld [vmem:[#allocation2 + $0x250] sm:$0xff]  ;;  %v774_v32 = vpack.c.bf16 %v182_v28, %v181_v27  ;;  %v166_v33 = vld [vmem:[#allocation2 + $0x258] sm:$0xff]  ;;  %v167_v42 = vld [vmem:[#allocation2 + $0x260] sm:$0xff] }
  0x35   :  { %721 = vmatpush3.bf16.msra.mxu0 %v720_v35  ;;  %v197_v34 = vld [vmem:[#allocation2 + $0x350] sm:$0xff]  ;;  %v198_v35 = vld [vmem:[#allocation2 + $0x358] sm:$0xff]  ;;  %v776_v39 = vpack.c.bf16 %v166_v33, %v165_v31  ;;  %v203_v61 = vld [vmem:[#allocation2 + $0x380] sm:$0xff] }
  0x36   :  { %753 = vmatpush3.bf16.msra.mxu1 %v752_v36  ;;  %755 = vmatprep.subr.bf16.mxu0 %v754_v37  ;;  %v183_v36 = vld [vmem:[#allocation2 + $0x2e0] sm:$0xff]  ;;  %v184_v37 = vld [vmem:[#allocation2 + $0x2e8] sm:$0xff]  ;;  %v802_v41 = vpack.c.bf16 %v198_v35, %v197_v34  ;;  %v185_v47 = vld [vmem:[#allocation2 + $0x2f0] sm:$0xff] }
  0x37   :  { %786 = vmatprep.subr.bf16.mxu1 %v889_v38  ;;  %v778_v43 = vpack.c.bf16 %v184_v37, %v183_v36  ;;  %v186_v48 = vld [vmem:[#allocation2 + $0x2f8] sm:$0xff]  ;;  %v201_v56 = vld [vmem:[#allocation2 + $0x370] sm:$0xff]  ;;  %v208_v7 = vld [vmem:[#allocation2 + $0x3a8] sm:$0xff] }
  0x38   :  { %v170_v54 = vld [vmem:[#allocation2 + $0x278] sm:$0xff]  ;;  %v205_v3 = vld [vmem:[#allocation2 + $0x390] sm:$0xff]  ;;  %v212_v13 = vld [vmem:[#allocation2 + $0x3c8] sm:$0xff] }
  0x39   :  { %v202_v57 = vld [vmem:[#allocation2 + $0x378] sm:$0xff]  ;;  %v213_v15 = vld [vmem:[#allocation2 + $0x3d0] sm:$0xff]  ;;  %v215_v19 = vld [vmem:[#allocation2 + $0x3e0] sm:$0xff] }
  0x3a   :  { %v808_v60 = vpack.c.bf16 %v202_v57, %v201_v56  ;;  %v206_v4 = vld [vmem:[#allocation2 + $0x398] sm:$0xff] }
  0x3b   :  { %v814_v5 = vpack.c.bf16 %v206_v4, %v205_v3  ;;  %v214_v16 = vld [vmem:[#allocation2 + $0x3d8] sm:$0xff] }
  0x3c   :  { %v826_v17 = vpack.c.bf16 %v214_v16, %v213_v15 }
  0x94   :  { %v935_v50 = vpop.permute.xlu0 %38 }
  0x95   :  { %vm44_vm0 = vcmp.eq.s32.totalorder %v30_v44, %v935_v50  ;;  %vm46_vm1 = vcmp.eq.s32.totalorder %v32_v45, %v935_v50  ;;  %vm43_vm2 = vcmp.eq.s32.totalorder %v930_v40, %v935_v50  ;;  %vm45_vm3 = vcmp.eq.s32.totalorder %v31_v46, %v935_v50 }
  0x96   :  { %560 = vmatprep.mubr.msk.f32.mxu0 %vm44_vm0, %v890_v59  ;;  %564 = vmatprep.mubr.msk.f32.mxu1 %vm46_vm1, %v890_v59  ;;  %vm50_vm4 = vcmp.eq.s32.totalorder %v938_v55, %v935_v50  ;;  %vm48_vm10 = vcmp.eq.s32.totalorder %v952_v1, %v935_v50  ;;  %vm49_vm15 = vcmp.eq.s32.totalorder %v35_v18, %v935_v50 }
  0x97   :  { %561 = vmatmul.mubr.msk.f32.vlgmr.msra.gmra.mrb[0].mxu0 %vm43_vm2, %v890_v59  ;;  %565 = vmatmul.mubr.msk.f32.vlgmr.msra.gmra.mrb[0].mxu1 %vm45_vm3, %v890_v59  ;;  %v551_v10 = vsel %vm50_vm4, 1.0, %v891_v9 }
  0x98   :  { %757 = vmatpush3.bf16.msra.mxu0 %v756_v51  ;;  %788 = vmatpush1.bf16.msra.mxu1 %v787_v52  ;;  %v949_v62 = vpop.permute.xlu0 %41  ;;  %v169_v52 = vld [vmem:[#allocation2 + $0x270] sm:$0xff] }
  0x99   :  { %vm52_vm5 = vcmp.eq.s32.totalorder %v30_v44, %v949_v62  ;;  %vm54_vm6 = vcmp.eq.s32.totalorder %v32_v45, %v949_v62  ;;  %759 = vmatprep.subr.bf16.mxu0 %v758_v53  ;;  %789 = vmatprep.subr.bf16.mxu1 %v889_v38  ;;  %vm51_vm7 = vcmp.eq.s32.totalorder %v930_v40, %v949_v62  ;;  %v168_v44 = vld [vmem:[#allocation2 + $0x268] sm:$0xff]  ;;  %v199_v45 = vld [vmem:[#allocation2 + $0x360] sm:$0xff] }
  0x9a   :  { %562 = vmatprep.mubr.msk.f32.mxu0 %vm52_vm5, %v890_v59  ;;  %566 = vmatprep.mubr.msk.f32.mxu1 %vm54_vm6, %v890_v59  ;;  %vm53_vm8 = vcmp.eq.s32.totalorder %v31_v46, %v949_v62  ;;  %v200_v46 = vld [vmem:[#allocation2 + $0x368] sm:$0xff]  ;;  %v780_v49 = vpack.c.bf16 %v168_v44, %v167_v42  ;;  %v782_v53 = vpack.c.bf16 %v186_v48, %v185_v47 }
  0x9b   :  { %563 = vmatmul.mubr.msk.f32.gmra.mrb[2].mxu0 %vm51_vm7, %v890_v59  ;;  %567 = vmatmul.mubr.msk.f32.gmra.mrb[2].mxu1 %vm53_vm8, %v890_v59  ;;  %v805_v51 = vpack.c.bf16 %v200_v46, %v199_v45  ;;  %v784_v58 = vpack.c.bf16 %v170_v54, %v169_v52  ;;  %vm56_vm12 = vcmp.eq.s32.totalorder %v952_v1, %v949_v62 }
  0x9c   :  { %761 = vmatpush3.bf16.msra.mxu0 %v760_v63  ;;  %791 = vmatpush1.bf16.msra.mxu1 %v790_v0  ;;  %v204_v63 = vld [vmem:[#allocation2 + $0x388] sm:$0xff]  ;;  %v33_v0 = vadd.s32 512, %v930_v40  ;;  %vm58_vm14 = vcmp.eq.s32.totalorder %v938_v55, %v949_v62  ;;  %vm57_vm0 = vcmp.eq.s32.totalorder %v35_v18, %v949_v62 }
  0x9d   :  { %568 = vmatprep.mubr.msk.f32.mxu0 %vm48_vm10, %v890_v59  ;;  %572 = vmatprep.mubr.msk.f32.mxu1 %vm216_vm9, %v551_v10  ;;  %v811_v2 = vpack.c.bf16 %v204_v63, %v203_v61  ;;  %v209_v10 = vld [vmem:[#allocation2 + $0x3b0] sm:$0xff] }
  0x9e   :  { %763 = vmatprep.subr.bf16.mxu0 %v762_v6  ;;  %792 = vmatprep.subr.bf16.mxu1 %v889_v38  ;;  %vm47_vm11 = vcmp.eq.s32.totalorder %v33_v0, %v935_v50  ;;  %v207_v6 = vld [vmem:[#allocation2 + $0x3a0] sm:$0xff]  ;;  %vm55_vm13 = vcmp.eq.s32.totalorder %v33_v0, %v949_v62 }
  0x9f   :  { %v817_v8 = vpack.c.bf16 %v208_v7, %v207_v6 }
  0xa0   :  { %765 = vmatpush3.bf16.msra.mxu0 %v764_v11  ;;  %794 = vmatpush1.bf16.msra.mxu1 %v793_v12  ;;  %v210_v11 = vld [vmem:[#allocation2 + $0x3b8] sm:$0xff]  ;;  %v211_v12 = vld [vmem:[#allocation2 + $0x3c0] sm:$0xff] }
  0xa1   :  { %767 = vmatprep.subr.bf16.mxu0 %v766_v14  ;;  %795 = vmatprep.subr.bf16.mxu1 %v889_v38  ;;  %v820_v1 = vpack.c.bf16 %v210_v11, %v209_v10  ;;  %v823_v14 = vpack.c.bf16 %v212_v13, %v211_v12 }
  0xa4   :  { %769 = vmatpush3.bf16.msra.mxu0 %v768_v20  ;;  %797 = vmatpush1.bf16.msra.mxu1 %v796_v21  ;;  %v559_v20 = vsel %vm58_vm14, 1.0, %v891_v9 }
  0xa5   :  { %771 = vmatprep.subr.bf16.mxu0 %v770_v23  ;;  %798 = vmatprep.subr.bf16.mxu1 %v889_v38 }
  0xa8   :  { %773 = vmatpush3.bf16.msra.mxu0 %v772_v29  ;;  %800 = vmatpush1.bf16.msra.mxu1 %v799_v30 }
  0xa9   :  { %775 = vmatprep.subr.bf16.mxu0 %v774_v32  ;;  %801 = vmatprep.subr.bf16.mxu1 %v889_v38 }
  0xac   :  { %777 = vmatpush3.bf16.msra.mxu0 %v776_v39  ;;  %803 = vmatpush1.bf16.msra.mxu1 %v802_v41 }
  0xad   :  { %779 = vmatprep.subr.bf16.mxu0 %v778_v43  ;;  %804 = vmatprep.subr.bf16.mxu1 %v889_v38 }
  0xb0   :  { %781 = vmatpush3.bf16.msra.mxu0 %v780_v49  ;;  %806 = vmatpush1.bf16.msra.mxu1 %v805_v51 }
  0xb1   :  { %783 = vmatprep.subr.bf16.mxu0 %v782_v53  ;;  %807 = vmatprep.subr.bf16.mxu1 %v889_v38 }
  0xb4   :  { %785 = vmatpush3.bf16.msra.mxu0 %v784_v58  ;;  %809 = vmatpush1.bf16.msra.mxu1 %v808_v60 }
  0xb5   :  { %810 = vmatprep.subr.bf16.mxu1 %v889_v38 }
  0xb7   :  { %569 = vmatmul.mubr.msk.f32.vlgmr.msra.gmra.mrb[4].mxu0 %vm47_vm11, %v890_v59 }
  0xb8   :  { %570 = vmatprep.mubr.msk.f32.mxu0 %vm56_vm12, %v890_v59  ;;  %812 = vmatpush1.bf16.msra.mxu1 %v811_v2 }
  0xb9   :  { %813 = vmatprep.subr.bf16.mxu1 %v889_v38 }
  0xbb   :  { %571 = vmatmul.mubr.msk.f32.gmra.mrb[6].mxu0 %vm55_vm13, %v890_v59 }
  0xbc   :  { %815 = vmatpush1.bf16.msra.mxu1 %v814_v5 }
  0xbd   :  { %816 = vmatprep.subr.bf16.mxu1 %v889_v38 }
  0xc0   :  { %818 = vmatpush1.bf16.msra.mxu1 %v817_v8 }
  0xc1   :  { %819 = vmatprep.subr.bf16.mxu1 %v889_v38 }
  0xc4   :  { %821 = vmatpush1.bf16.msra.mxu1 %v820_v1 }
  0xc5   :  { %822 = vmatprep.subr.bf16.mxu1 %v889_v38 }
  0xc8   :  { %824 = vmatpush1.bf16.msra.mxu1 %v823_v14 }
  0xc9   :  { %825 = vmatprep.subr.bf16.mxu1 %v889_v38 }
  0xcc   :  { %827 = vmatpush1.bf16.msra.mxu1 %v826_v17 }
  0xcd   :  { %504 = vmatprep.subr.mxu1 %v891_v9 }
  0xd0   :  { %505 = vmatpush1.msra.mxu1 %v215_v19 }
  0xd1   :  { %573 = vmatmul.mubr.msk.f32.vlgmr.msra.gmra.mrb[4].mxu1 %vm49_vm15, %v890_v59 }
  0xd2   :  { %574 = vmatprep.mubr.msk.f32.mxu1 %vm216_vm9, %v559_v20 }
  0xd5   :  { %575 = vmatmul.mubr.msk.f32.gmra.mrb[6].mxu1 %vm57_vm0, %v890_v59 }
 0x16a   :  { %v608_v38 = vpop.f32.mrb[0].mxu0  ;;  %v646_v40 = vpop.f32.mrb[0].mxu1 }
 0x16b   :  { %v609_v21 = vpop.f32.mrb[1].mxu0  ;;  %v647_v22 = vpop.f32.mrb[1].mxu1 }
 0x16c   :  { %v610_v23 = vadd.f32 %v609_v21, %v608_v38  ;;  %v648_v24 = vadd.f32 %v647_v22, %v646_v40 }
 0x16e   :  { %v365_v55 = vadd.f32 %v648_v24, %v610_v23  ;;  %v611_v25 = vpop.f32.mrb[2].mxu0  ;;  %v649_v26 = vpop.f32.mrb[2].mxu1 }
 0x16f   :  { %v612_v50 = vpop.f32.mrb[3].mxu0  ;;  %v650_v27 = vpop.f32.mrb[3].mxu1 }
 0x170   :  { %v613_v28 = vadd.f32 %v612_v50, %v611_v25  ;;  %v651_v29 = vadd.f32 %v650_v27, %v649_v26 }
 0x172   :  { %v370_v9 = vadd.f32 %v651_v29, %v613_v28 }
 0x18a   :  { %v684_v30 = vpop.f32.mrb[4].mxu0 }
 0x18b   :  { %v685_v31 = vpop.f32.mrb[5].mxu0 }
 0x18c   :  { %v686_v32 = vadd.f32 %v685_v31, %v684_v30 }
 0x18e   :  { %v687_v62 = vpop.f32.mrb[6].mxu0  ;;  %v440_v33 = vadd.f32 %v686_v32, %v365_v55 }
 0x18f   :  { %v688_v59 = vpop.f32.mrb[7].mxu0 }
 0x190   :  { %v689_v34 = vadd.f32 %v688_v59, %v687_v62 }
 0x192   :  { %v445_v35 = vadd.f32 %v689_v34, %v370_v9 }
 0x1a4   :  { %v514_v36 = vpop.f32.mrb[4].mxu1 }
 0x1a5   :  { %v515_v37 = vadd.f32 %v514_v36, %v440_v33  ;;  %v516_v39 = vpop.f32.mrb[5].mxu1 }
 0x1a7   :  { %v523_v41 = vmul.f32 11.313708, %v515_v37 }
 0x1a8   :  { %v519_v42 = vpop.f32.mrb[6].mxu1 }
 0x1a9   :  { %525 = vst [vmem:[#allocation5] sm:$0xff] %v523_v41  ;;  %v520_v43 = vadd.f32 %v519_v42, %v445_v35  ;;  %v521_v44 = vpop.f32.mrb[7].mxu1 }
 0x1ab   :  { %v524_v45 = vmul.f32 11.313708, %v520_v43 }
 0x1ad   :  { %526 = vst [vmem:[#allocation5 + $0x8] sm:$0xff] %v524_v45 }
 0x1ae   :  { %870 = shalt.err (!%p867_p12)
}
 0x1af   :  { %s871_s30 = scalar_lea.hbm %s1021_s2, 256 }
 0x1b0   :  { %p872_p13 = scmp.ne.s32.totalorder %s1021_s2, %s871_s30  ;;  %p875_p0 = scmp.lt.u32.totalorder %s871_s30, %s1021_s2 }
 0x1b2   :  { %p877_p1 = pnand %p875_p0, %p872_p13 }
 0x1b4   :  { %880 = shalt.err (!%p877_p1)
}
 0x1b5   :  { %538 = dma.vmem_to_hbm [thread:$0]  %s533_s1, 256, %s1021_s2, [#allocation4], %s886_s19, %s886_s19, %s887_s20  }
 0x1b6   :  { %883 = dma.done.wait [#allocation4], 256  }
 0x1b7   :  { %884 = vsyncadd [#allocation4], 4294967040 }
 0x1b8   :  { %542 = vsyncpa [#allocation3], 1 }
 0x1b9   :  { %543 = vsyncpa [#allocation4], 1 }

</bundles_post_ra>
